<compile_context>
chip_gen: v7x
topology: tpu7x:2x2x1
jax: 0.10.0
libtpu: 0.0.40
codegen_flags: <defaults>
</compile_context>

<pallas_src>
import functools

import jax
import jax.numpy as jnp
from jax.experimental import pallas as pl
from jax.experimental.pallas import tpu as pltpu

GAMMA = 1.5
EPS = 1e-07  # kept for parity with the module; unused in forward (as in PyTorch)

# TODO(synk): PyTorch CrossEntropyLoss extras (ignore_index=-100, class weights)
# are not modelled; the module uses the defaults, so plain CE is the semantics.


def _ce_tile_kernel(x_ref, t_ref, o_ref, *, n_total):
    """Per-tile CE partial sum. No cross-step state -> 'parallel' grid axis."""
    i = pl.program_id(0)

    x = x_ref[...].astype(jnp.float32)            # (TN, C), widened in-kernel
    t = t_ref[...]                                # (TN, 1) int32
    tn = x.shape[0]

    # Numerically-stable log-softmax pieces; xm shared by gather and exp-sum.
    m = jnp.max(x, axis=-1, keepdims=True)                               # (TN, 1)
    xm = x - m                                                           # (TN, C)
    cls = jax.lax.broadcasted_iota(jnp.int32, x.shape, 1)                # (TN, C)
    tgt = jnp.sum(jnp.where(cls == t, xm, 0.0), axis=-1, keepdims=True)  # (TN, 1)
    lse = jnp.log(jnp.sum(jnp.exp(xm), axis=-1, keepdims=True))          # (TN, 1)
    ce = lse - tgt                                                       # (TN, 1)

    # Mask padded rows of the (possibly partial) last tile.  Emitted only when
    # the last tile really is partial (static check).  It is a SELECT, so any
    # Inf/NaN produced from unspecified padded-row VMEM never leaks.
    if n_total % tn != 0:
        row = i * tn + jax.lax.broadcasted_iota(jnp.int32, ce.shape, 0)
        ce = jnp.where(row < n_total, ce, 0.0)

    # One lane-dense (8,128) unmasked store per step; wrapper reads [i, 0, 0].
    o_ref[...] = jnp.full(o_ref.shape, jnp.sum(ce), dtype=jnp.float32)


def _physical_vmem_bytes():
    try:
        info = pltpu.get_tpu_info()
    except Exception:
        return 64 * 1024 * 1024                      # conservative (v7x floor)
    for attr in ("vmem_capacity_bytes", "vmem_bytes", "vmem_size_bytes"):
        v = getattr(info, attr, None)
        if v:
            return int(v)
    return 64 * 1024 * 1024


def _vmem_limit_bytes(physical_vmem):
    # 128 MiB parts (v5e/v6e): raise the scoped limit well above the 16/32 MiB
    # defaults so tiles can grow (fewer ~0.35us/step overheads).
    # 64 MiB parts (v7x, per TensorCore): stay <= 48 MiB so the pipeline plus
    # compiler scratch keep headroom under physical VMEM.
    if physical_vmem >= 128 * 1024 * 1024:
        return 96 * 1024 * 1024
    return min(48 * 1024 * 1024, (physical_vmem * 3) // 4)


# Full-tile f32 temporaries live at once: widened x, xm, exp(xm), iota/select.
_F32_TEMPS = 4


def _pick_tile_rows(n, c, itemsize, vmem_limit):
    # Byte-capped tile sizing (no hard row cap): account for the double-buffered
    # native-dtype input tile AND the full-tile f32 intermediates, so bf16
    # inputs cannot exceed the scoped VMEM limit and break the pipeline.
    c_pad = ((c + 127) // 128) * 128                                  # lane padding
    bytes_per_row = c_pad * (2 * itemsize + _F32_TEMPS * 4) + 2 * 4   # + targets
    budget = (vmem_limit * 3) // 4                 # headroom: outputs, compiler scratch
    tn = max(8, budget // bytes_per_row)
    if tn >= n:
        return n                                   # full dim is always a legal block
    return (tn // 8) * 8                           # sublane-aligned tile


def focal_loss(logits, target, gamma=GAMMA, block_rows=None):
    # logits: (N, C) float (any dtype); target: (N,) int
    n, c = logits.shape
    t2d = target.astype(jnp.int32).reshape(n, 1)

    itemsize = jnp.dtype(logits.dtype).itemsize
    vmem_limit = _vmem_limit_bytes(_physical_vmem_bytes())
    if block_rows is not None:
        tn = block_rows
        assert tn == n or tn % 8 == 0, "block_rows must be sublane-aligned or == N"
    else:
        tn = _pick_tile_rows(n, c, itemsize, vmem_limit)
    g = pl.cdiv(n, tn)

    kernel = functools.partial(_ce_tile_kernel, n_total=n)

    cost = pl.CostEstimate(
        flops=5 * n * c,
        transcendentals=n * c + 2 * n,
        bytes_accessed=n * c * itemsize + n * 4 + g * 8 * 128 * 4,
    )

    partials = pl.pallas_call(
        kernel,
        out_shape=jax.ShapeDtypeStruct((g, 8, 128), jnp.float32),
        grid_spec=pltpu.PrefetchScalarGridSpec(
            num_scalar_prefetch=0,
            grid=(g,),
            in_specs=[
                pl.BlockSpec((tn, c), lambda i: (i, 0)),
                pl.BlockSpec((tn, 1), lambda i: (i, 0)),
            ],
            out_specs=pl.BlockSpec((1, 8, 128), lambda i: (i, 0, 0)),
        ),
        compiler_params=pltpu.CompilerParams(
            dimension_semantics=("parallel",),   # no carry -> megacore / v7x 2-TC split
            vmem_limit_bytes=vmem_limit,
        ),
        cost_estimate=cost,
    )(logits, t2d)   # NOTE: logits passed in native dtype (no wrapper up-cast)

    # O(grid) finalize in the wrapper: batch-mean CE, then the focal transform.
    logp = jnp.sum(partials[:, 0, 0]) / jnp.float32(n)
    p = jnp.exp(-logp)
    return (1.0 - p) ** jnp.float32(gamma) * logp


def focal_loss_ref(logits, target, gamma=GAMMA):
    # pure-JAX reference for sanity checking
    x = logits.astype(jnp.float32)
    lse = jax.scipy.special.logsumexp(x, axis=-1)
    tgt = jnp.take_along_axis(x, target[:, None].astype(jnp.int32), axis=-1)[:, 0]
    logp = jnp.mean(lse - tgt)
    p = jnp.exp(-logp)
    return (1.0 - p) ** gamma * logp


if __name__ == "__main__":
    key = jax.random.PRNGKey(0)
    k1, k2, k3, k4 = jax.random.split(key, 4)

    # 1) small f32 case (single tile, grid of 1)
    N, C = 8, 32
    logits = jax.random.normal(k1, (N, C), dtype=jnp.float32)
    target = jax.random.randint(k2, (N,), 0, C, dtype=jnp.int32)
    loss = jax.block_until_ready(focal_loss(logits, target))
    ref = jax.block_until_ready(focal_loss_ref(logits, target))
    assert jnp.allclose(loss, ref, rtol=1e-5, atol=1e-5), (loss, ref)

    # 2) multi-tile case with a partial last tile (parallel grid + row masking)
    N2, C2 = 300, 160
    logits2 = jax.random.normal(k3, (N2, C2), dtype=jnp.float32)
    target2 = jax.random.randint(k4, (N2,), 0, C2, dtype=jnp.int32)
    loss2 = jax.block_until_ready(focal_loss(logits2, target2, block_rows=128))
    ref2 = jax.block_until_ready(focal_loss_ref(logits2, target2))
    assert jnp.allclose(loss2, ref2, rtol=1e-5, atol=1e-5), (loss2, ref2)

    # 3) native bf16 input (no wrapper up-cast; widened to f32 inside the kernel)
    logits3 = logits2.astype(jnp.bfloat16)
    loss3 = jax.block_until_ready(focal_loss(logits3, target2, block_rows=128))
    ref3 = jax.block_until_ready(focal_loss_ref(logits3, target2))
    assert jnp.allclose(loss3, ref3, rtol=1e-4, atol=1e-4), (loss3, ref3)

    print("KERNEL_OK")
</pallas_src>

<mosaic_0001>
module attributes {stable_mosaic.version = 11 : i64} {
  func.func @_ce_tile_kernel(%arg0: i32, %arg1: memref<8x32xf32, #tpu.memory_space<vmem>>, %arg2: memref<8x1xi32, #tpu.memory_space<vmem>>, %arg3: memref<1x8x128xf32, #tpu.memory_space<vmem>>) attributes {dimension_semantics = [#tpu.dimension_semantics<parallel>], iteration_bounds = array<i64: 1>, scalar_prefetch = 0 : i64, scratch_operands = 0 : i64, tpu.core_type = #tpu.core_type<tc>, window_params = [{transform_indices = @transform_0, window_bounds = array<i64: 8, 32>}, {transform_indices = @transform_1, window_bounds = array<i64: 8, 1>}, {transform_indices = @transform_2, window_bounds = array<i64: 1, 8, 128>}]} {
    %c0 = arith.constant 0 : index
    %c0_0 = arith.constant 0 : index
    %0 = vector.load %arg1[%c0, %c0_0] : memref<8x32xf32, #tpu.memory_space<vmem>>, vector<8x32xf32>
    %c0_1 = arith.constant 0 : index
    %c0_2 = arith.constant 0 : index
    %1 = vector.load %arg2[%c0_1, %c0_2] : memref<8x1xi32, #tpu.memory_space<vmem>>, vector<8x1xi32>
    %cst = arith.constant dense<0xFF800000> : vector<8xf32>
    %2 = vector.multi_reduction <maximumf>, %0, %cst [1] : vector<8x32xf32> to vector<8xf32>
    %3 = vector.shape_cast %2 : vector<8xf32> to vector<8x1xf32>
    %4 = vector.broadcast %3 : vector<8x1xf32> to vector<8x32xf32>
    %5 = arith.subf %0, %4 : vector<8x32xf32>
    %6 = tpu.iota {dimensions = array<i32: 1>} : vector<8x32xi32>
    %7 = vector.broadcast %1 : vector<8x1xi32> to vector<8x32xi32>
    %8 = arith.cmpi eq, %6, %7 : vector<8x32xi32>
    %cst_3 = arith.constant 0.000000e+00 : f32
    %9 = vector.broadcast %cst_3 : f32 to vector<8x32xf32>
    %10 = arith.select %8, %5, %9 : vector<8x32xi1>, vector<8x32xf32>
    %cst_4 = arith.constant dense<0.000000e+00> : vector<8xf32>
    %11 = vector.multi_reduction <add>, %10, %cst_4 [1] : vector<8x32xf32> to vector<8xf32>
    %12 = vector.shape_cast %11 : vector<8xf32> to vector<8x1xf32>
    %13 = math.exp %5 : vector<8x32xf32>
    %cst_5 = arith.constant dense<0.000000e+00> : vector<8xf32>
    %14 = vector.multi_reduction <add>, %13, %cst_5 [1] : vector<8x32xf32> to vector<8xf32>
    %15 = vector.shape_cast %14 : vector<8xf32> to vector<8x1xf32>
    %16 = math.log %15 : vector<8x1xf32>
    %17 = arith.subf %16, %12 : vector<8x1xf32>
    %18 = vector.shape_cast %17 : vector<8x1xf32> to vector<1x8x1xf32>
    %cst_6 = arith.constant dense<0.000000e+00> : vector<1xf32>
    %19 = vector.multi_reduction <add>, %18, %cst_6 [1, 2] : vector<1x8x1xf32> to vector<1xf32>
    %20 = vector.shape_cast %19 : vector<1xf32> to vector<1x1x1xf32>
    %21 = vector.extract %20[0, 0, 0] : f32 from vector<1x1x1xf32>
    %22 = vector.broadcast %21 : f32 to vector<1x8x128xf32>
    %c0_7 = arith.constant 0 : index
    %c0_8 = arith.constant 0 : index
    %c0_9 = arith.constant 0 : index
    %23 = vector.load %arg3[%c0_7, %c0_8, %c0_9] : memref<1x8x128xf32, #tpu.memory_space<vmem>>, vector<1x8x128xf32>
    tpu.vector_store %arg3[%c0_7, %c0_8, %c0_9], %22 {strides = array<i32>} : memref<1x8x128xf32, #tpu.memory_space<vmem>>, vector<1x8x128xf32>,
    return
  }
  func.func @transform_0(%arg0: i32) -> (i32, i32) {
    %c0_i32 = arith.constant 0 : i32
    %c0_i32_0 = arith.constant 0 : i32
    return %arg0, %c0_i32 : i32, i32
  }
  func.func @transform_1(%arg0: i32) -> (i32, i32) {
    %c0_i32 = arith.constant 0 : i32
    %c0_i32_0 = arith.constant 0 : i32
    return %arg0, %c0_i32 : i32, i32
  }
  func.func @transform_2(%arg0: i32) -> (i32, i32, i32) {
    %c0_i32 = arith.constant 0 : i32
    %c0_i32_0 = arith.constant 0 : i32
    %c0_i32_1 = arith.constant 0 : i32
    return %arg0, %c0_i32, %c0_i32_0 : i32, i32, i32
  }
}

</mosaic_0001>

<bundles_post_ra>
// kernel: tpu_custom_call.1
= control target key start
LH: loop header
LB: loop body
LE: loop exit
PB: predicated region body
PF: predicated region fallthrough
CT: control target
= control target key end

     0   :  { %vm14_vm0 = vcmask 261120   ;;  %s135_s0 = inlined_call_operand.vmem [shape: f32[8,32], index: 0, kind: input, shape index: {}]   ;;  %s136_s1 = inlined_call_operand.vmem [shape: s32[8,1], index: 1, kind: input, shape index: {}]   ;;  %s137_s2 = inlined_call_operand.hbm [shape: f32[1,8,128], index: 2, kind: output, shape index: {}]  }
   0x1   :  { %v12_v0 = vld [vmem:[%s135_s0] sm:$0xff] }
   0x2   :  { %7 = vsyncpa [#allocation3], 0  ;;  %v15_v1 = vsel %vm14_vm0, %v12_v0, -inf  ;;  %v97_v2 = vmov 0   ;;  %v13_v3 = vld [vmem:[%s136_s1] sm:$0xff]  ;;  %v19_v7 = vlaneseq  ;;  %vm37_vm2 = vcmask 7168  }
   0x3   :  { %68 = vset.pattern.permute.xlu0 %v97_v2  ;;  %s98_s0 = smov [#allocation2]  }
   0x4   :  { %16 = vmax.xlane.f32.xlu0 %v15_v1  ;;  %v20_v8 = vand.u32 127, %v19_v7  ;;  %s56_s1 = sshll.u32 %s98_s0, 4  ;;  %s57_s1 = int_to_ptr.vmem [resolvable:$true] %s56_s1 }
   0x5   :  { %s73_s14 = scalar_lea.vmem %s57_s1, 128  ;;  %p78_p1 = scmp.lt.s32.totalorder %s57_s1, %s57_s1 }
   0x6   :  { %p74_p0 = scmp.ne.s32.totalorder %s57_s1, %s73_s14  ;;  %p79_p2 = scmp.lt.s32.totalorder %s73_s14, %s73_s14 }
   0x8   :  { %p80_p3 = por %p79_p2, %p78_p1 }
   0xa   :  { %p81_p4 = pnand %p80_p3, %p74_p0 }
  0x1a   :  { %22 = vperm.xlu0 %68, %v13_v3  }
  0x91   :  { %v17_v4 = vpop.xlane.xlu0 %16 }
  0x92   :  { %v18_v5 = vsub.f32 %v12_v0, %v17_v4 }
  0x94   :  { %v29_v6 = vmul.f32 1.442695, %v18_v5 }
  0x96   :  { %69 = vpow2.f32 %v29_v6 }
  0x99   :  { %v23_v9 = vpop.permute.xlu0 %22 }
  0x9a   :  { %vm24_vm1 = vcmp.eq.s32.totalorder %v20_v8, %v23_v9 }
  0x9b   :  { %v25_v12 = vsel %vm24_vm1, %v18_v5, 0.0 }
  0x9c   :  { %v26_v13 = vsel %vm14_vm0, %v25_v12, 0.0 }
  0xa0   :  { %v70_v10 = vpop.eup %69 }
  0xa1   :  { %v31_v11 = vsel %vm14_vm0, %v70_v10, 0.0 }
  0xa2   :  { %32 = vadd.xlane.f32.xlu1 %v31_v11 }
  0xa6   :  { %27 = vadd.xlane.f32.xlu1 %v26_v13 }
 0x12f   :  { %v33_v14 = vpop.xlane.xlu1 %32 }
 0x130   :  { %71 = vlog2.f32 %v33_v14 }
 0x133   :  { %v28_v17 = vpop.xlane.xlu1 %27 }
 0x13a   :  { %v72_v15 = vpop.eup %71 }
 0x13b   :  { %v35_v16 = vmul.f32 0.6931472, %v72_v15 }
 0x13d   :  { %v36_v18 = vsub.f32 %v35_v16, %v28_v17 }
 0x13f   :  { %v38_v19 = vsel %vm37_vm2, %v36_v18, 0.0 }
 0x140   :  { %39 = vadd.xlane.f32.xlu1 %v38_v19 }
 0x1cd   :  { %v40_v20 = vpop.xlane.xlu1 %39 }
 0x1ce   :  { %v41_v21 = vrot.slane %v40_v20, 4 }
 0x1d0   :  { %v42_v22 = vadd.f32 %v41_v21, %v40_v20 }
 0x1d2   :  { %v43_v23 = vrot.slane %v42_v22, 2 }
 0x1d4   :  { %v44_v24 = vadd.f32 %v43_v23, %v42_v22 }
 0x1d6   :  { %v45_v25 = vrot.slane %v44_v24, 1 }
 0x1d8   :  { %v46_v26 = vadd.f32 %v45_v25, %v44_v24 }
 0x1da   :  { %64 = vpush %v46_v26 }
 0x20b   :  { %s65_s13 = spop %64 }
 0x20c   :  { %v48_v27 = vstv %s65_s13 }
 0x20d   :  { %49 = vst [vmem:[#allocation2] sm:$0xff] %v48_v27 }
 0x20e   :  { %84 = shalt.err (!%p81_p4)
}
 0x20f   :  { %s85_s17 = scalar_lea.hbm %s137_s2, 128 }
 0x210   :  { %p86_p5 = scmp.ne.s32.totalorder %s137_s2, %s85_s17  ;;  %p89_p6 = scmp.lt.u32.totalorder %s85_s17, %s137_s2 }
 0x212   :  { %p91_p7 = pnand %p89_p6, %p86_p5 }
 0x214   :  { %94 = shalt.err (!%p91_p7)
}
 0x215   :  { %59 = dma.vmem_to_hbm [thread:$0]  %s57_s1, 128, %s137_s2, [#allocation3]  }
 0x216   :  { %95 = dma.done.wait [#allocation3], 128  }
 0x217   :  { %96 = vsyncadd [#allocation3], 4294967168 }
 0x218   :  { %63 = vsyncpa [#allocation3], 1 }

</bundles_post_ra>
